<compile_context>
chip_gen: v6e
topology: v6e:2x2x1
jax: 0.10.0
libtpu: 0.0.40
codegen_flags: <defaults>
</compile_context>

<pallas_src>
import jax
import jax.numpy as jnp
from jax.experimental import pallas as pl
from jax.experimental.pallas import tpu as pltpu

_LANES = 128                 # vreg lane width -> lane-dense, unmasked stores
_MAX_BLOCK_ROWS = 2048       # 2048 x 128 f32 = 1 MiB per block
_PALLAS_MIN_BYTES = 256 * 1024   # below this, fused XLA elementwise is faster


def _round_up(a: int, b: int) -> int:
    return ((a + b - 1) // b) * b


def _sublanes(dtype) -> int:
    # Sublane packing granularity: f32 -> 8, bf16/f16 -> 16, int8/fp8 -> 32.
    return {4: 8, 2: 16, 1: 32}.get(jnp.dtype(dtype).itemsize, 8)


def _scale_bias_kernel(params_ref, x_ref, o_ref):
    # params_ref: SMEM (2,) f32 -> [weight, bias]
    # x_ref, o_ref: VMEM (block_rows, 128) tiles
    w = params_ref[0]
    b = params_ref[1]
    o_ref[...] = (x_ref[...] * w + b).astype(o_ref.dtype)


def cnn_forward(x, weight, bias, *, force_pallas=False, donate_x=False):
    """Forward pass of CNN: Conv2d(1, 1, kernel_size=1) == scalar scale + bias.

    Args:
      x:      (N, 1, H, W) activations, NCHW like PyTorch (f32 or bf16).
      weight: (1, 1, 1, 1) conv weight.
      bias:   (1,)        conv bias.
      force_pallas: skip the tiny-input XLA fallback (used by the demo/tests).
      donate_x: caller guarantees x is donated (e.g. jit donate_argnums); only
        then may the kernel alias x's HBM buffer for the output.
    Returns:
      (N, 1, H, W), same dtype as x.
    """
    N, C, H, W = x.shape
    assert C == 1, "Conv2d(1, 1, 1) expects a single input channel"
    total = N * C * H * W
    itemsize = jnp.dtype(x.dtype).itemsize

    # Tiny inputs: pallas_call launch + reshape overhead dominates; let XLA fuse.
    if total * itemsize < _PALLAS_MIN_BYTES and not force_pallas:
        w = weight.reshape(()).astype(jnp.float32)
        b = bias.reshape(()).astype(jnp.float32)
        return (x.astype(jnp.float32) * w + b).astype(x.dtype)

    # Pack the two scalars into one SMEM array.
    params = jnp.stack(
        [weight.reshape(()), bias.reshape(())]
    ).astype(jnp.float32)

    # Lane-dense 2D slab.  Pad only up to ONE (sublane, 128) tile (not a whole
    # block) so already-aligned sizes hit a zero-copy path.
    sub = _sublanes(x.dtype)
    tile_elems = sub * _LANES
    padded_total = _round_up(total, tile_elems)
    rows = padded_total // _LANES

    x_flat = x.reshape((-1,))
    padded = padded_total != total
    if padded:
        x_flat = jnp.pad(x_flat, (0, padded_total - total))
    x2d = x_flat.reshape((rows, _LANES))

    # Block sizing: cap at ~1 MiB f32, round to the dtype's sublane packing,
    # and aim for >=2 grid tiles so v7x's two TensorCores both get work.
    target = min(_MAX_BLOCK_ROWS, max(sub, pl.cdiv(rows, 2)))
    block_rows = _round_up(target, sub)
    grid = (pl.cdiv(rows, block_rows),)   # ragged last block is masked by Pallas

    cost = pl.CostEstimate(
        flops=2 * padded_total,
        transcendentals=0,
        bytes_accessed=2 * padded_total * itemsize,
    )

    # In-place y = w*x + b only when it is actually free: caller donated x and
    # no pad copy was made (otherwise XLA inserts a defensive copy).
    aliases = {1: 0} if (donate_x and not padded) else {}

    out2d = pl.pallas_call(
        _scale_bias_kernel,
        out_shape=jax.ShapeDtypeStruct((rows, _LANES), x2d.dtype),
        grid=grid,
        in_specs=[
            pl.BlockSpec(memory_space=pltpu.SMEM),                  # [w, b] scalars
            pl.BlockSpec((block_rows, _LANES), lambda i: (i, 0)),   # activation tile
        ],
        out_specs=pl.BlockSpec((block_rows, _LANES), lambda i: (i, 0)),
        input_output_aliases=aliases,
        cost_estimate=cost,
        compiler_params=pltpu.CompilerParams(
            dimension_semantics=("parallel",),   # shard tiles across TCs on v7x
        ),
    )(params, x2d)

    out_flat = out2d.reshape((-1,))
    if padded:
        out_flat = out_flat[:total]
    return out_flat.reshape((N, C, H, W))


if __name__ == "__main__":
    key = jax.random.PRNGKey(0)
    k_x, k_w, k_b, k_x2, k_x3 = jax.random.split(key, 5)

    # Deterministic parameters (shapes mirror Conv2d(1, 1, 1)).
    weight = jax.random.normal(k_w, (1, 1, 1, 1), dtype=jnp.float32)
    bias = jax.random.normal(k_b, (1,), dtype=jnp.float32)

    def ref(xv):
        wv = weight.reshape(()).astype(jnp.float32)
        bv = bias.reshape(()).astype(jnp.float32)
        return (xv.astype(jnp.float32) * wv + bv).astype(xv.dtype)

    # 1) Toy shape from the PyTorch harness; force the Pallas path.
    x1 = jax.random.normal(k_x, (2, 1, 16, 16), dtype=jnp.float32)
    y1 = jax.block_until_ready(cnn_forward(x1, weight, bias, force_pallas=True))
    assert y1.shape == x1.shape and y1.dtype == x1.dtype
    assert jnp.allclose(y1, ref(x1), atol=1e-6, rtol=1e-6), "mismatch (toy f32)"

    # 2) sublane*128-aligned size -> zero-copy (no pad / no slice), 2-tile grid.
    x2 = jax.random.normal(k_x2, (2, 1, 64, 128), dtype=jnp.float32)
    y2 = jax.block_until_ready(cnn_forward(x2, weight, bias, force_pallas=True))
    assert jnp.allclose(y2, ref(x2), atol=1e-6, rtol=1e-6), "mismatch (aligned f32)"

    # 3) bf16 with misaligned spatial size -> 16-sublane packing + ragged tail.
    x3 = jax.random.normal(k_x3, (2, 1, 17, 13), dtype=jnp.bfloat16)
    y3 = jax.block_until_ready(cnn_forward(x3, weight, bias, force_pallas=True))
    assert y3.shape == x3.shape and y3.dtype == jnp.bfloat16
    assert jnp.allclose(y3.astype(jnp.float32), ref(x3).astype(jnp.float32),
                        atol=2e-2, rtol=2e-2), "mismatch (bf16)"

    # 4) Tiny-input fallback path (fused XLA op, no pallas_call).
    y4 = jax.block_until_ready(cnn_forward(x1, weight, bias))
    assert jnp.allclose(y4, ref(x1), atol=1e-6, rtol=1e-6), "mismatch (fallback)"

    print("KERNEL_OK")
</pallas_src>

<mosaic_0001>
module attributes {stable_mosaic.version = 11 : i64} {
  func.func @_scale_bias_kernel(%arg0: i32, %arg1: memref<2xf32, #tpu.memory_space<smem>>, %arg2: memref<8x128xf32, #tpu.memory_space<vmem>>, %arg3: memref<8x128xf32, #tpu.memory_space<vmem>>) attributes {dimension_semantics = [#tpu.dimension_semantics<parallel>], iteration_bounds = array<i64: 1>, scalar_prefetch = 0 : i64, scratch_operands = 0 : i64, tpu.core_type = #tpu.core_type<tc>, window_params = [{transform_indices = @transform_0, window_bounds = array<i64: 2>}, {transform_indices = @transform_1, window_bounds = array<i64: 8, 128>}, {transform_indices = @transform_2, window_bounds = array<i64: 8, 128>}]} {
    %c0 = arith.constant 0 : index
    %0 = memref.load %arg1[%c0] : memref<2xf32, #tpu.memory_space<smem>>
    %c1 = arith.constant 1 : index
    %1 = memref.load %arg1[%c1] : memref<2xf32, #tpu.memory_space<smem>>
    %c0_0 = arith.constant 0 : index
    %c0_1 = arith.constant 0 : index
    %2 = vector.load %arg2[%c0_0, %c0_1] : memref<8x128xf32, #tpu.memory_space<vmem>>, vector<8x128xf32>
    %3 = vector.broadcast %0 : f32 to vector<8x128xf32>
    %4 = arith.mulf %2, %3 : vector<8x128xf32>
    %5 = vector.broadcast %1 : f32 to vector<8x128xf32>
    %6 = arith.addf %4, %5 : vector<8x128xf32>
    %c0_2 = arith.constant 0 : index
    %c0_3 = arith.constant 0 : index
    %7 = vector.load %arg3[%c0_2, %c0_3] : memref<8x128xf32, #tpu.memory_space<vmem>>, vector<8x128xf32>
    tpu.vector_store %arg3[%c0_2, %c0_3], %6 {strides = array<i32>} : memref<8x128xf32, #tpu.memory_space<vmem>>, vector<8x128xf32>,
    return
  }
  func.func @transform_0(%arg0: i32) -> i32 {
    %c0_i32 = arith.constant 0 : i32
    %c0_i32_0 = arith.constant 0 : i32
    return %c0_i32 : i32
  }
  func.func @transform_1(%arg0: i32) -> (i32, i32) {
    %c0_i32 = arith.constant 0 : i32
    %c0_i32_0 = arith.constant 0 : i32
    return %arg0, %c0_i32 : i32, i32
  }
  func.func @transform_2(%arg0: i32) -> (i32, i32) {
    %c0_i32 = arith.constant 0 : i32
    %c0_i32_0 = arith.constant 0 : i32
    return %arg0, %c0_i32 : i32, i32
  }
}

</mosaic_0001>

<bundles_post_ra>
// kernel: tpu_custom_call.1
= control target key start
LH: loop header
LB: loop body
LE: loop exit
PB: predicated region body
PF: predicated region fallthrough
CT: control target
= control target key end

     0   :  { %7 = vsyncpa [#allocation5], 0  ;;  %s144_s0 = inlined_call_operand.hbm [shape: f32[2], index: 0, kind: input, shape index: {}]   ;;  %s145_s1 = inlined_call_operand.hbm [shape: f32[8,128], index: 1, kind: input, shape index: {}]   ;;  %s146_s2 = inlined_call_operand.hbm [shape: f32[8,128], index: 2, kind: output, shape index: {}]  }
   0x1   :  { %8 = vsyncpa [#allocation3], 0 }
   0x2   :  { %9 = vsyncpa [#allocation4], 0  ;;  %s117_s9 = smov [#allocation2]   ;;  %s118_s12 = smov [#allocation6]  }
   0x3   :  { %17 = dma.hbm_to_smem %s144_s0, 16, %s117_s9, [#allocation5]  }
   0x4   :  { %s24_s13 = sshll.u32 %s118_s12, 4  ;;  %s25_s13 = int_to_ptr.vmem [resolvable:$true] %s24_s13 }
   0x5   :  { %s79_s14 = scalar_lea.vmem %s25_s13, 128  ;;  %p84_p1 = scmp.lt.s32.totalorder %s25_s13, %s25_s13 }
   0x6   :  { %p80_p0 = scmp.ne.s32.totalorder %s25_s13, %s79_s14  ;;  %p85_p2 = scmp.lt.s32.totalorder %s79_s14, %s79_s14 }
   0x8   :  { %p86_p3 = por %p85_p2, %p84_p1 }
   0xa   :  { %p87_p4 = pnand %p86_p3, %p80_p0 }
   0xc   :  { %90 = shalt.err (!%p87_p4)
}
   0xd   :  { %27 = dma.hbm_to_vmem [thread:$0]  %s145_s1, 128, %s25_s13, [#allocation3]  }
   0xe   :  { %111 = dma.done.wait [#allocation5], 16  }
   0xf   :  { %112 = vsyncadd [#allocation5], 4294967280 }
  0x10   :  { %113 = dma.done.wait [#allocation3], 128  }
  0x11   :  { %114 = vsyncadd [#allocation3], 4294967168 }
  0x12   :  { %34 = sfence }
  0x13   :  { %s35_s0 = sld [smem:[#allocation2]]  ;;  %v37_v0 = vld [vmem:[#allocation6] sm:$0xff]  ;;  %s119_s18 = smov [#allocation7]  }
  0x14   :  { %s59_s17 = sld [smem:[#allocation2 + $0x1]]  ;;  %s49_s19 = sshll.u32 %s119_s18, 4  ;;  %s50_s19 = int_to_ptr.vmem [resolvable:$true] %s49_s19 }
  0x15   :  { %s91_s20 = scalar_lea.vmem %s50_s19, 128  ;;  %p96_p6 = scmp.lt.s32.totalorder %s50_s19, %s50_s19 }
  0x16   :  { %p92_p5 = scmp.ne.s32.totalorder %s50_s19, %s91_s20  ;;  %p97_p7 = scmp.lt.s32.totalorder %s91_s20, %s91_s20 }
  0x18   :  { %p98_p8 = por %p97_p7, %p96_p6 }
  0x19   :  { %v38_v1 = vstv %s35_s0 }
  0x1a   :  { %v39_v2 = vmul.f32 %v38_v1, %v37_v0  ;;  %v40_v3 = vstv %s59_s17  ;;  %p99_p9 = pnand %p98_p8, %p92_p5 }
  0x1c   :  { %v41_v4 = vadd.f32 %v40_v3, %v39_v2 }
  0x1e   :  { %42 = vst [vmem:[#allocation7] sm:$0xff] %v41_v4 }
  0x1f   :  { %102 = shalt.err (!%p99_p9)
}
  0x20   :  { %52 = dma.vmem_to_hbm [thread:$0]  %s50_s19, 128, %s146_s2, [#allocation4]  }
  0x21   :  { %115 = dma.done.wait [#allocation4], 128  }
  0x22   :  { %116 = vsyncadd [#allocation4], 4294967168 }
  0x23   :  { %56 = vsyncpa [#allocation3], 1 }
  0x24   :  { %57 = vsyncpa [#allocation4], 1 }
  0x25   :  { %58 = vsyncpa [#allocation5], 1 }

</bundles_post_ra>
